<compile_context>
chip_gen: v7x
topology: tpu7x:2x2x1
jax: 0.10.0
libtpu: 0.0.40
codegen_flags: <defaults>
</compile_context>

<pallas_src>
import functools

import jax
import jax.numpy as jnp
from jax.experimental import pallas as pl
from jax.experimental.pallas import tpu as pltpu

HP = 128   # lane width of every packed gate / fc / hidden segment (one vreg)


def _round_up(x, m):
    return ((x + m - 1) // m) * m


# ---------------------------------------------------------------------------
# Kernel: grid step t == one call of the PyTorch module's forward() with the
# hidden state carried from the previous step.
#
# Packed gate layout (columns of wx / wh[d] / gate bias), 128 lanes/segment:
#   seg 0: r  (x path in wx, h path in wh; biases summed)
#   seg 1: z  (x path in wx, h path in wh; biases summed)
#   seg 2: n, input path only   (x @ W_in + b_in)
#   seg 3: n, hidden path only  (h @ W_hn + b_hn)  -> multiplied by r in-kernel
# wx holds both directions side by side (8 segments); wh / wfc carry one slab
# per direction.
# ---------------------------------------------------------------------------
def seq2seq_kernel(tok_ref,        # SMEM (T, B) int32 -- scalar-prefetched ids
                   emb_ref,        # VMEM (V, 1, H) f32     -- resident
                   wx_ref,         # VMEM (H, 8*HP) bf16    -- resident
                   wh_ref,         # VMEM (2, HP, 4*HP) bf16-- resident
                   wfc_ref,        # VMEM (2, HP, Op) bf16  -- resident
                   bias_ref,       # VMEM (1, 8*HP + Op) f32-- resident
                   h0_ref,         # VMEM (2, B, HP) f32    -- resident
                   logits_ref,     # VMEM (1, B, Op) f32    -- block t
                   hfin_ref,       # VMEM (2, B, HP) f32    -- resident output
                   state_ref,      # VMEM (2, B, HP) f32 scratch: carried state
                   xbuf_ref):      # VMEM (B, H) f32 scratch: gathered embeddings
    t = pl.program_id(0)
    B = state_ref.shape[1]

    # Initialize the carried hidden state from the caller's hidden on step 0.
    @pl.when(t == 0)
    def _():
        state_ref[...] = h0_ref[...]

    # Fused embedding gather: table is VMEM-resident, ids are SMEM scalars.
    # TODO(synk): nn.Dropout is treated as identity (eval-mode semantics).
    for b in range(B):
        xbuf_ref[pl.ds(b, 1), :] = emb_ref[tok_ref[t, b]]
    x16 = xbuf_ref[...].astype(jnp.bfloat16)                       # (B, H)

    # x-path pre-activations for all gates of both directions: one MXU dot.
    gx = jnp.dot(x16, wx_ref[...], preferred_element_type=jnp.float32)

    def gru_dir(d):
        h_prev = state_ref[d]                                      # (B, HP) f32
        gh = jnp.dot(h_prev.astype(jnp.bfloat16), wh_ref[d],
                     preferred_element_type=jnp.float32)           # (B, 4*HP)
        g = (gx[:, d * 4 * HP:(d + 1) * 4 * HP] + gh
             + bias_ref[:, d * 4 * HP:(d + 1) * 4 * HP])
        # All slices land on whole-vreg (128-lane) boundaries.
        r = jax.nn.sigmoid(g[:, 0 * HP:1 * HP])
        z = jax.nn.sigmoid(g[:, 1 * HP:2 * HP])
        n = jnp.tanh(g[:, 2 * HP:3 * HP] + r * g[:, 3 * HP:4 * HP])
        # Pad lanes: g == 0 there -> n == 0 and h_prev == 0, so they stay 0.
        return (1.0 - z) * n + z * h_prev

    hf = gru_dir(0)
    hb = gru_dir(1)
    state_ref[0] = hf
    state_ref[1] = hb

    # FC head: two accumulating dots on resident slabs (no lane concat).
    logits_ref[0] = (
        jnp.dot(hf.astype(jnp.bfloat16), wfc_ref[0],
                preferred_element_type=jnp.float32)
        + jnp.dot(hb.astype(jnp.bfloat16), wfc_ref[1],
                  preferred_element_type=jnp.float32)
        + bias_ref[:, 8 * HP:]
    )

    # Emit the final hidden state once, on the last decode step.
    @pl.when(t == pl.num_programs(0) - 1)
    def _():
        hfin_ref[...] = state_ref[...]


# ---------------------------------------------------------------------------
# Parameter init (PyTorch-like) and packing into the kernel layout.
# ---------------------------------------------------------------------------
def init_params(key, input_size, hidden_size, output_size):
    H = hidden_size
    ks = jax.random.split(key, 12)
    bound = 1.0 / jnp.sqrt(H)

    def u(k, shape):
        return jax.random.uniform(k, shape, jnp.float32, -bound, bound)

    return dict(
        embedding=jax.random.normal(ks[0], (input_size, H), jnp.float32),
        # GRU weights stored transposed (H, 3H), gate order (r, z, n).
        w_ih_f=u(ks[1], (H, 3 * H)), w_hh_f=u(ks[2], (H, 3 * H)),
        b_ih_f=u(ks[3], (1, 3 * H)), b_hh_f=u(ks[4], (1, 3 * H)),
        w_ih_b=u(ks[5], (H, 3 * H)), w_hh_b=u(ks[6], (H, 3 * H)),
        b_ih_b=u(ks[7], (1, 3 * H)), b_hh_b=u(ks[8], (1, 3 * H)),
        w_fc=u(ks[9], (2 * H, output_size)),
        b_fc=u(ks[10], (1, output_size)),
    )


def pack_params(params, hidden_size, output_size):
    """Pack torch-layout params into the kernel's lane-padded bf16 layout."""
    H, O = hidden_size, output_size
    Op = _round_up(O, 128)
    f32, bf16 = jnp.float32, jnp.bfloat16

    def gate(w, g):               # (H, 3H) -> (H, H), gate g in {0:r, 1:z, 2:n}
        return w[:, g * H:(g + 1) * H]

    wx = jnp.zeros((H, 8 * HP), f32)
    wh = jnp.zeros((2, HP, 4 * HP), f32)
    bg = jnp.zeros((8 * HP,), f32)
    dirs = [
        (params["w_ih_f"], params["w_hh_f"], params["b_ih_f"][0], params["b_hh_f"][0]),
        (params["w_ih_b"], params["w_hh_b"], params["b_ih_b"][0], params["b_hh_b"][0]),
    ]
    for d, (wih, whh, bih, bhh) in enumerate(dirs):
        base = d * 4 * HP
        # seg 0: r
        wx = wx.at[:, base + 0 * HP:base + 0 * HP + H].set(gate(wih, 0))
        wh = wh.at[d, :H, 0 * HP:0 * HP + H].set(gate(whh, 0))
        bg = bg.at[base + 0 * HP:base + 0 * HP + H].set(bih[0:H] + bhh[0:H])
        # seg 1: z
        wx = wx.at[:, base + 1 * HP:base + 1 * HP + H].set(gate(wih, 1))
        wh = wh.at[d, :H, 1 * HP:1 * HP + H].set(gate(whh, 1))
        bg = bg.at[base + 1 * HP:base + 1 * HP + H].set(bih[H:2 * H] + bhh[H:2 * H])
        # seg 2: n, input path
        wx = wx.at[:, base + 2 * HP:base + 2 * HP + H].set(gate(wih, 2))
        bg = bg.at[base + 2 * HP:base + 2 * HP + H].set(bih[2 * H:3 * H])
        # seg 3: n, hidden path (multiplied by r inside the kernel)
        wh = wh.at[d, :H, 3 * HP:3 * HP + H].set(gate(whh, 2))
        bg = bg.at[base + 3 * HP:base + 3 * HP + H].set(bhh[2 * H:3 * H])

    wfc = jnp.zeros((2, HP, Op), f32)
    wfc = wfc.at[0, :H, :O].set(params["w_fc"][:H])
    wfc = wfc.at[1, :H, :O].set(params["w_fc"][H:])
    bfc = jnp.zeros((Op,), f32).at[:O].set(params["b_fc"][0])
    bias = jnp.concatenate([bg, bfc])[None, :]            # (1, 8*HP + Op) f32

    return dict(
        embedding=params["embedding"].astype(f32)[:, None, :],   # (V, 1, H)
        wx=wx.astype(bf16), wh=wh.astype(bf16), wfc=wfc.astype(bf16),
        bias=bias,
    )


# ---------------------------------------------------------------------------
# Forward wrappers.
# ---------------------------------------------------------------------------
@functools.partial(jax.jit, static_argnames=("out_size",))
def seq2seq_forward_seq(tokens, hidden, packed, *, out_size):
    """Fused multi-step decode.

    tokens: (T, B) int32, hidden: (2, B, H) f32.  Equivalent to calling the
    module's forward() once per step with the hidden state carried.
    Returns (logits (T, B, out_size), final hidden (2, B, H)).
    """
    T, B = tokens.shape
    H = hidden.shape[-1]
    V = packed["embedding"].shape[0]
    Op = packed["wfc"].shape[-1]

    h0_pad = jnp.zeros((2, B, HP), jnp.float32).at[:, :, :H].set(hidden)

    const2 = lambda t, tok: (0, 0)
    const3 = lambda t, tok: (0, 0, 0)
    grid_spec = pltpu.PrefetchScalarGridSpec(
        num_scalar_prefetch=1,                       # token ids -> SMEM
        grid=(T,),
        in_specs=[
            pl.BlockSpec((V, 1, H), const3),         # embedding table (resident)
            pl.BlockSpec((H, 8 * HP), const2),       # gate weights, x path
            pl.BlockSpec((2, HP, 4 * HP), const3),   # gate weights, h paths
            pl.BlockSpec((2, HP, Op), const3),       # fc weights
            pl.BlockSpec((1, 8 * HP + Op), const2),  # gate + fc biases
            pl.BlockSpec((2, B, HP), const3),        # initial hidden (padded)
        ],
        out_specs=(
            pl.BlockSpec((1, B, Op), lambda t, tok: (t, 0, 0)),   # logits[t]
            pl.BlockSpec((2, B, HP), const3),                     # final hidden
        ),
        scratch_shapes=[
            pltpu.VMEM((2, B, HP), jnp.float32),     # carried hidden state
            pltpu.VMEM((B, H), jnp.float32),         # gathered embeddings
        ],
    )

    flops_step = (2 * B * H * 8 * HP            # x-path gate dot
                  + 2 * 2 * B * HP * 4 * HP     # h-path gate dots
                  + 2 * 2 * B * HP * Op)        # fc dots
    bytes_resident = (V * H * 4 + H * 8 * HP * 2 + 2 * HP * 4 * HP * 2
                      + 2 * HP * Op * 2 + (8 * HP + Op) * 4 + 2 * B * HP * 4)
    cost = pl.CostEstimate(
        flops=T * flops_step,
        transcendentals=T * 6 * B * HP,
        bytes_accessed=bytes_resident + T * B * 4 + T * B * Op * 4 + 2 * B * HP * 4,
    )

    logits_pad, h_pad = pl.pallas_call(
        seq2seq_kernel,
        grid_spec=grid_spec,
        out_shape=(
            jax.ShapeDtypeStruct((T, B, Op), jnp.float32),
            jax.ShapeDtypeStruct((2, B, HP), jnp.float32),
        ),
        compiler_params=pltpu.CompilerParams(
            dimension_semantics=("arbitrary",)),      # carried recurrence
        cost_estimate=cost,
    )(tokens, packed["embedding"], packed["wx"], packed["wh"],
      packed["wfc"], packed["bias"], h0_pad)

    # Slice the lane padding off once per sequence, not once per step.
    return logits_pad[..., :out_size], h_pad[..., :H]


def seq2seq_forward(tokens, hidden, packed, *, out_size):
    """Module-exact forward: tokens (1, B) -> (logits (B, O), hidden (2, B, H))."""
    logits, h = seq2seq_forward_seq(tokens, hidden, packed, out_size=out_size)
    return logits[0], h


# ---------------------------------------------------------------------------
# Pure-JAX reference (PyTorch GRU semantics), optionally mirroring the
# kernel's bf16 matmul operands for tight numerical comparison.
# ---------------------------------------------------------------------------
def reference_forward_seq(tokens, hidden, params, *, mixed_precision=True):
    f32 = jnp.float32

    def mm(a, w):
        if mixed_precision:
            a = a.astype(jnp.bfloat16).astype(f32)
            w = w.astype(jnp.bfloat16).astype(f32)
        return a @ w

    def gru(x, h, w_ih, w_hh, b_ih, b_hh):
        gi = mm(x, w_ih) + b_ih
        gh = mm(h, w_hh) + b_hh
        i_r, i_z, i_n = jnp.split(gi, 3, axis=-1)
        h_r, h_z, h_n = jnp.split(gh, 3, axis=-1)
        r = jax.nn.sigmoid(i_r + h_r)
        z = jax.nn.sigmoid(i_z + h_z)
        n = jnp.tanh(i_n + r * h_n)
        return (1.0 - z) * n + z * h

    H = hidden.shape[-1]
    outs, h = [], hidden
    for t in range(tokens.shape[0]):
        x = params["embedding"][tokens[t]]
        hf = gru(x, h[0], params["w_ih_f"], params["w_hh_f"],
                 params["b_ih_f"], params["b_hh_f"])
        hb = gru(x, h[1], params["w_ih_b"], params["w_hh_b"],
                 params["b_ih_b"], params["b_hh_b"])
        outs.append(mm(hf, params["w_fc"][:H]) + mm(hb, params["w_fc"][H:])
                    + params["b_fc"])
        h = jnp.stack([hf, hb], axis=0)
    return jnp.stack(outs, axis=0), h


if __name__ == "__main__":
    INPUT_SIZE = 64      # source vocab
    HIDDEN_SIZE = 32
    OUTPUT_SIZE = 64     # target vocab
    BATCH = 8
    SEQ = 8              # fused decode length (time loop inside the kernel)

    key = jax.random.PRNGKey(0)
    pkey, tkey, hkey = jax.random.split(key, 3)
    params = init_params(pkey, INPUT_SIZE, HIDDEN_SIZE, OUTPUT_SIZE)
    packed = pack_params(params, HIDDEN_SIZE, OUTPUT_SIZE)

    hidden0 = jax.random.uniform(hkey, (2, BATCH, HIDDEN_SIZE), jnp.float32,
                                 -1.0, 1.0)

    # --- single step (T=1): exactly the module's forward() -------------------
    tok1 = jax.random.randint(tkey, (1, BATCH), 0, INPUT_SIZE, dtype=jnp.int32)
    logits1, hidden1 = seq2seq_forward(tok1, hidden0, packed,
                                       out_size=OUTPUT_SIZE)
    jax.block_until_ready((logits1, hidden1))
    ref_l1, ref_h1 = reference_forward_seq(tok1, hidden0, params)
    assert logits1.shape == (BATCH, OUTPUT_SIZE)
    assert hidden1.shape == (2, BATCH, HIDDEN_SIZE)
    assert jnp.allclose(logits1, ref_l1[0], atol=2e-4, rtol=2e-4)
    assert jnp.allclose(hidden1, ref_h1, atol=2e-4, rtol=2e-4)

    # --- fused multi-step decode (SEQ steps inside one pallas_call) ----------
    tok_seq = jax.random.randint(jax.random.fold_in(tkey, 1), (SEQ, BATCH),
                                 0, INPUT_SIZE, dtype=jnp.int32)
    logits_seq, hidden_seq = seq2seq_forward_seq(tok_seq, hidden0, packed,
                                                 out_size=OUTPUT_SIZE)
    jax.block_until_ready((logits_seq, hidden_seq))
    ref_lseq, ref_hseq = reference_forward_seq(tok_seq, hidden0, params)
    assert jnp.allclose(logits_seq, ref_lseq, atol=2e-4, rtol=2e-4)
    assert jnp.allclose(hidden_seq, ref_hseq, atol=2e-4, rtol=2e-4)

    # Sanity check vs. a pure-f32 reference (bounds the bf16 weight rounding).
    f32_l, _ = reference_forward_seq(tok_seq, hidden0, params,
                                     mixed_precision=False)
    assert jnp.allclose(logits_seq, f32_l, atol=5e-2, rtol=5e-2)

    print("KERNEL_OK")
</pallas_src>

<mosaic_0001>
module attributes {stable_mosaic.version = 11 : i64} {
  func.func @seq2seq_kernel(%arg0: i32, %arg1: memref<1x8xi32, #tpu.memory_space<smem>>, %arg2: memref<64x1x32xf32, #tpu.memory_space<vmem>>, %arg3: memref<32x1024xbf16, #tpu.memory_space<vmem>>, %arg4: memref<2x128x512xbf16, #tpu.memory_space<vmem>>, %arg5: memref<2x128x128xbf16, #tpu.memory_space<vmem>>, %arg6: memref<1x1152xf32, #tpu.memory_space<vmem>>, %arg7: memref<2x8x128xf32, #tpu.memory_space<vmem>>, %arg8: memref<1x8x128xf32, #tpu.memory_space<vmem>>, %arg9: memref<2x8x128xf32, #tpu.memory_space<vmem>>, %arg10: memref<2x8x128xf32, #tpu.memory_space<vmem>>, %arg11: memref<8x32xf32, #tpu.memory_space<vmem>>) attributes {dimension_semantics = [#tpu.dimension_semantics<arbitrary>], iteration_bounds = array<i64: 1>, scalar_prefetch = 1 : i64, scratch_operands = 2 : i64, tpu.core_type = #tpu.core_type<tc>, window_params = [{pipeline_mode = #tpu.pipeline_mode<synchronous>, transform_indices = @transform_0, window_bounds = array<i64: 64, 1, 32>}, {pipeline_mode = #tpu.pipeline_mode<synchronous>, transform_indices = @transform_1, window_bounds = array<i64: 32, 1024>}, {pipeline_mode = #tpu.pipeline_mode<synchronous>, transform_indices = @transform_2, window_bounds = array<i64: 2, 128, 512>}, {pipeline_mode = #tpu.pipeline_mode<synchronous>, transform_indices = @transform_3, window_bounds = array<i64: 2, 128, 128>}, {pipeline_mode = #tpu.pipeline_mode<synchronous>, transform_indices = @transform_4, window_bounds = array<i64: 1, 1152>}, {pipeline_mode = #tpu.pipeline_mode<synchronous>, transform_indices = @transform_5, window_bounds = array<i64: 2, 8, 128>}, {transform_indices = @transform_6, window_bounds = array<i64: 1, 8, 128>}, {pipeline_mode = #tpu.pipeline_mode<synchronous>, transform_indices = @transform_7, window_bounds = array<i64: 2, 8, 128>}]} {
    %c0_i32 = arith.constant 0 : i32
    %0 = arith.cmpi eq, %arg0, %c0_i32 : i32
    %1 = arith.extui %0 : i1 to i32
    %c0_i32_0 = arith.constant 0 : i32
    %2 = arith.cmpi ne, %1, %c0_i32_0 : i32
    scf.if %2 {
      %c0_80 = arith.constant 0 : index
      %c0_81 = arith.constant 0 : index
      %c0_82 = arith.constant 0 : index
      %145 = vector.load %arg7[%c0_80, %c0_81, %c0_82] : memref<2x8x128xf32, #tpu.memory_space<vmem>>, vector<2x8x128xf32>
      %c0_83 = arith.constant 0 : index
      %c0_84 = arith.constant 0 : index
      %c0_85 = arith.constant 0 : index
      %146 = vector.load %arg10[%c0_83, %c0_84, %c0_85] : memref<2x8x128xf32, #tpu.memory_space<vmem>>, vector<2x8x128xf32>
      tpu.vector_store %arg10[%c0_83, %c0_84, %c0_85], %145 {strides = array<i32>} : memref<2x8x128xf32, #tpu.memory_space<vmem>>, vector<2x8x128xf32>,
    } else {
    }
    %3 = arith.index_cast %arg0 : i32 to index
    %c0 = arith.constant 0 : index
    %4 = memref.load %arg1[%3, %c0] : memref<1x8xi32, #tpu.memory_space<smem>>
    %5 = arith.index_cast %4 : i32 to index
    %c0_1 = arith.constant 0 : index
    %c0_2 = arith.constant 0 : index
    %6 = vector.load %arg2[%5, %c0_1, %c0_2] : memref<64x1x32xf32, #tpu.memory_space<vmem>>, vector<1x1x32xf32>
    %7 = vector.shape_cast %6 : vector<1x1x32xf32> to vector<1x32xf32>
    %c0_3 = arith.constant 0 : index
    %c0_4 = arith.constant 0 : index
    %8 = vector.load %arg11[%c0_3, %c0_4] : memref<8x32xf32, #tpu.memory_space<vmem>>, vector<1x32xf32>
    tpu.vector_store %arg11[%c0_3, %c0_4], %7 {strides = array<i32>} : memref<8x32xf32, #tpu.memory_space<vmem>>, vector<1x32xf32>,
    %9 = arith.index_cast %arg0 : i32 to index
    %c1 = arith.constant 1 : index
    %10 = memref.load %arg1[%9, %c1] : memref<1x8xi32, #tpu.memory_space<smem>>
    %11 = arith.index_cast %10 : i32 to index
    %c0_5 = arith.constant 0 : index
    %c0_6 = arith.constant 0 : index
    %12 = vector.load %arg2[%11, %c0_5, %c0_6] : memref<64x1x32xf32, #tpu.memory_space<vmem>>, vector<1x1x32xf32>
    %13 = vector.shape_cast %12 : vector<1x1x32xf32> to vector<1x32xf32>
    %c1_7 = arith.constant 1 : index
    %c0_8 = arith.constant 0 : index
    %14 = vector.load %arg11[%c1_7, %c0_8] : memref<8x32xf32, #tpu.memory_space<vmem>>, vector<1x32xf32>
    tpu.vector_store %arg11[%c1_7, %c0_8], %13 {strides = array<i32>} : memref<8x32xf32, #tpu.memory_space<vmem>>, vector<1x32xf32>,
    %15 = arith.index_cast %arg0 : i32 to index
    %c2 = arith.constant 2 : index
    %16 = memref.load %arg1[%15, %c2] : memref<1x8xi32, #tpu.memory_space<smem>>
    %17 = arith.index_cast %16 : i32 to index
    %c0_9 = arith.constant 0 : index
    %c0_10 = arith.constant 0 : index
    %18 = vector.load %arg2[%17, %c0_9, %c0_10] : memref<64x1x32xf32, #tpu.memory_space<vmem>>, vector<1x1x32xf32>
    %19 = vector.shape_cast %18 : vector<1x1x32xf32> to vector<1x32xf32>
    %c2_11 = arith.constant 2 : index
    %c0_12 = arith.constant 0 : index
    %20 = vector.load %arg11[%c2_11, %c0_12] : memref<8x32xf32, #tpu.memory_space<vmem>>, vector<1x32xf32>
    tpu.vector_store %arg11[%c2_11, %c0_12], %19 {strides = array<i32>} : memref<8x32xf32, #tpu.memory_space<vmem>>, vector<1x32xf32>,
    %21 = arith.index_cast %arg0 : i32 to index
    %c3 = arith.constant 3 : index
    %22 = memref.load %arg1[%21, %c3] : memref<1x8xi32, #tpu.memory_space<smem>>
    %23 = arith.index_cast %22 : i32 to index
    %c0_13 = arith.constant 0 : index
    %c0_14 = arith.constant 0 : index
    %24 = vector.load %arg2[%23, %c0_13, %c0_14] : memref<64x1x32xf32, #tpu.memory_space<vmem>>, vector<1x1x32xf32>
    %25 = vector.shape_cast %24 : vector<1x1x32xf32> to vector<1x32xf32>
    %c3_15 = arith.constant 3 : index
    %c0_16 = arith.constant 0 : index
    %26 = vector.load %arg11[%c3_15, %c0_16] : memref<8x32xf32, #tpu.memory_space<vmem>>, vector<1x32xf32>
    tpu.vector_store %arg11[%c3_15, %c0_16], %25 {strides = array<i32>} : memref<8x32xf32, #tpu.memory_space<vmem>>, vector<1x32xf32>,
    %27 = arith.index_cast %arg0 : i32 to index
    %c4 = arith.constant 4 : index
    %28 = memref.load %arg1[%27, %c4] : memref<1x8xi32, #tpu.memory_space<smem>>
    %29 = arith.index_cast %28 : i32 to index
    %c0_17 = arith.constant 0 : index
    %c0_18 = arith.constant 0 : index
    %30 = vector.load %arg2[%29, %c0_17, %c0_18] : memref<64x1x32xf32, #tpu.memory_space<vmem>>, vector<1x1x32xf32>
    %31 = vector.shape_cast %30 : vector<1x1x32xf32> to vector<1x32xf32>
    %c4_19 = arith.constant 4 : index
    %c0_20 = arith.constant 0 : index
    %32 = vector.load %arg11[%c4_19, %c0_20] : memref<8x32xf32, #tpu.memory_space<vmem>>, vector<1x32xf32>
    tpu.vector_store %arg11[%c4_19, %c0_20], %31 {strides = array<i32>} : memref<8x32xf32, #tpu.memory_space<vmem>>, vector<1x32xf32>,
    %33 = arith.index_cast %arg0 : i32 to index
    %c5 = arith.constant 5 : index
    %34 = memref.load %arg1[%33, %c5] : memref<1x8xi32, #tpu.memory_space<smem>>
    %35 = arith.index_cast %34 : i32 to index
    %c0_21 = arith.constant 0 : index
    %c0_22 = arith.constant 0 : index
    %36 = vector.load %arg2[%35, %c0_21, %c0_22] : memref<64x1x32xf32, #tpu.memory_space<vmem>>, vector<1x1x32xf32>
    %37 = vector.shape_cast %36 : vector<1x1x32xf32> to vector<1x32xf32>
    %c5_23 = arith.constant 5 : index
    %c0_24 = arith.constant 0 : index
    %38 = vector.load %arg11[%c5_23, %c0_24] : memref<8x32xf32, #tpu.memory_space<vmem>>, vector<1x32xf32>
    tpu.vector_store %arg11[%c5_23, %c0_24], %37 {strides = array<i32>} : memref<8x32xf32, #tpu.memory_space<vmem>>, vector<1x32xf32>,
    %39 = arith.index_cast %arg0 : i32 to index
    %c6 = arith.constant 6 : index
    %40 = memref.load %arg1[%39, %c6] : memref<1x8xi32, #tpu.memory_space<smem>>
    %41 = arith.index_cast %40 : i32 to index
    %c0_25 = arith.constant 0 : index
    %c0_26 = arith.constant 0 : index
    %42 = vector.load %arg2[%41, %c0_25, %c0_26] : memref<64x1x32xf32, #tpu.memory_space<vmem>>, vector<1x1x32xf32>
    %43 = vector.shape_cast %42 : vector<1x1x32xf32> to vector<1x32xf32>
    %c6_27 = arith.constant 6 : index
    %c0_28 = arith.constant 0 : index
    %44 = vector.load %arg11[%c6_27, %c0_28] : memref<8x32xf32, #tpu.memory_space<vmem>>, vector<1x32xf32>
    tpu.vector_store %arg11[%c6_27, %c0_28], %43 {strides = array<i32>} : memref<8x32xf32, #tpu.memory_space<vmem>>, vector<1x32xf32>,
    %45 = arith.index_cast %arg0 : i32 to index
    %c7 = arith.constant 7 : index
    %46 = memref.load %arg1[%45, %c7] : memref<1x8xi32, #tpu.memory_space<smem>>
    %47 = arith.index_cast %46 : i32 to index
    %c0_29 = arith.constant 0 : index
    %c0_30 = arith.constant 0 : index
    %48 = vector.load %arg2[%47, %c0_29, %c0_30] : memref<64x1x32xf32, #tpu.memory_space<vmem>>, vector<1x1x32xf32>
    %49 = vector.shape_cast %48 : vector<1x1x32xf32> to vector<1x32xf32>
    %c7_31 = arith.constant 7 : index
    %c0_32 = arith.constant 0 : index
    %50 = vector.load %arg11[%c7_31, %c0_32] : memref<8x32xf32, #tpu.memory_space<vmem>>, vector<1x32xf32>
    tpu.vector_store %arg11[%c7_31, %c0_32], %49 {strides = array<i32>} : memref<8x32xf32, #tpu.memory_space<vmem>>, vector<1x32xf32>,
    %c0_33 = arith.constant 0 : index
    %c0_34 = arith.constant 0 : index
    %51 = vector.load %arg11[%c0_33, %c0_34] : memref<8x32xf32, #tpu.memory_space<vmem>>, vector<8x32xf32>
    %52 = arith.truncf %51 : vector<8x32xf32> to vector<8x32xbf16>
    %c0_35 = arith.constant 0 : index
    %c0_36 = arith.constant 0 : index
    %53 = vector.load %arg3[%c0_35, %c0_36] : memref<32x1024xbf16, #tpu.memory_space<vmem>>, vector<32x1024xbf16>
    %cst = arith.constant dense<0.000000e+00> : vector<8x1024xf32>
    %54 = tpu.matmul %52, %53, %cst {dimension_numbers = #tpu.dot_dimension_numbers<[1], [0], [0], [1], [0, 0, 1, 1], [], []>} : vector<8x32xbf16>, vector<32x1024xbf16>, vector<8x1024xf32> -> vector<8x1024xf32>
    %c0_37 = arith.constant 0 : index
    %c0_38 = arith.constant 0 : index
    %c0_39 = arith.constant 0 : index
    %55 = vector.load %arg10[%c0_37, %c0_38, %c0_39] : memref<2x8x128xf32, #tpu.memory_space<vmem>>, vector<1x8x128xf32>
    %56 = vector.shape_cast %55 : vector<1x8x128xf32> to vector<8x128xf32>
    %57 = arith.truncf %56 : vector<8x128xf32> to vector<8x128xbf16>
    %c0_40 = arith.constant 0 : index
    %c0_41 = arith.constant 0 : index
    %c0_42 = arith.constant 0 : index
    %58 = vector.load %arg4[%c0_40, %c0_41, %c0_42] : memref<2x128x512xbf16, #tpu.memory_space<vmem>>, vector<1x128x512xbf16>
    %59 = vector.shape_cast %58 : vector<1x128x512xbf16> to vector<128x512xbf16>
    %cst_43 = arith.constant dense<0.000000e+00> : vector<8x512xf32>
    %60 = tpu.matmul %57, %59, %cst_43 {dimension_numbers = #tpu.dot_dimension_numbers<[1], [0], [0], [1], [0, 0, 1, 1], [], []>} : vector<8x128xbf16>, vector<128x512xbf16>, vector<8x512xf32> -> vector<8x512xf32>
    %61 = vector.extract_strided_slice %54 {offsets = [0, 0], sizes = [8, 512], strides = [1, 1]} : vector<8x1024xf32> to vector<8x512xf32>
    %62 = arith.addf %61, %60 : vector<8x512xf32>
    %c0_44 = arith.constant 0 : index
    %c0_45 = arith.constant 0 : index
    %63 = vector.load %arg6[%c0_44, %c0_45] : memref<1x1152xf32, #tpu.memory_space<vmem>>, vector<1x512xf32>
    %64 = vector.broadcast %63 : vector<1x512xf32> to vector<8x512xf32>
    %65 = arith.addf %62, %64 : vector<8x512xf32>
    %66 = vector.extract_strided_slice %65 {offsets = [0, 0], sizes = [8, 128], strides = [1, 1]} : vector<8x512xf32> to vector<8x128xf32>
    %67 = arith.negf %66 : vector<8x128xf32>
    %68 = math.exp %67 : vector<8x128xf32>
    %cst_46 = arith.constant 1.000000e+00 : f32
    %69 = vector.broadcast %cst_46 : f32 to vector<8x128xf32>
    %70 = arith.addf %69, %68 : vector<8x128xf32>
    %71 = arith.divf %69, %70 : vector<8x128xf32>
    %72 = vector.extract_strided_slice %65 {offsets = [0, 128], sizes = [8, 128], strides = [1, 1]} : vector<8x512xf32> to vector<8x128xf32>
    %73 = arith.negf %72 : vector<8x128xf32>
    %74 = math.exp %73 : vector<8x128xf32>
    %cst_47 = arith.constant 1.000000e+00 : f32
    %75 = vector.broadcast %cst_47 : f32 to vector<8x128xf32>
    %76 = arith.addf %75, %74 : vector<8x128xf32>
    %77 = arith.divf %75, %76 : vector<8x128xf32>
    %78 = vector.extract_strided_slice %65 {offsets = [0, 256], sizes = [8, 128], strides = [1, 1]} : vector<8x512xf32> to vector<8x128xf32>
    %79 = vector.extract_strided_slice %65 {offsets = [0, 384], sizes = [8, 128], strides = [1, 1]} : vector<8x512xf32> to vector<8x128xf32>
    %80 = arith.mulf %71, %79 : vector<8x128xf32>
    %81 = arith.addf %78, %80 : vector<8x128xf32>
    %82 = math.tanh %81 : vector<8x128xf32>
    %cst_48 = arith.constant 1.000000e+00 : f32
    %83 = vector.broadcast %cst_48 : f32 to vector<8x128xf32>
    %84 = arith.subf %83, %77 : vector<8x128xf32>
    %85 = arith.mulf %84, %82 : vector<8x128xf32>
    %86 = arith.mulf %77, %56 : vector<8x128xf32>
    %87 = arith.addf %85, %86 : vector<8x128xf32>
    %c1_49 = arith.constant 1 : index
    %c0_50 = arith.constant 0 : index
    %c0_51 = arith.constant 0 : index
    %88 = vector.load %arg10[%c1_49, %c0_50, %c0_51] : memref<2x8x128xf32, #tpu.memory_space<vmem>>, vector<1x8x128xf32>
    %89 = vector.shape_cast %88 : vector<1x8x128xf32> to vector<8x128xf32>
    %90 = arith.truncf %89 : vector<8x128xf32> to vector<8x128xbf16>
    %c1_52 = arith.constant 1 : index
    %c0_53 = arith.constant 0 : index
    %c0_54 = arith.constant 0 : index
    %91 = vector.load %arg4[%c1_52, %c0_53, %c0_54] : memref<2x128x512xbf16, #tpu.memory_space<vmem>>, vector<1x128x512xbf16>
    %92 = vector.shape_cast %91 : vector<1x128x512xbf16> to vector<128x512xbf16>
    %cst_55 = arith.constant dense<0.000000e+00> : vector<8x512xf32>
    %93 = tpu.matmul %90, %92, %cst_55 {dimension_numbers = #tpu.dot_dimension_numbers<[1], [0], [0], [1], [0, 0, 1, 1], [], []>} : vector<8x128xbf16>, vector<128x512xbf16>, vector<8x512xf32> -> vector<8x512xf32>
    %94 = vector.extract_strided_slice %54 {offsets = [0, 512], sizes = [8, 512], strides = [1, 1]} : vector<8x1024xf32> to vector<8x512xf32>
    %95 = arith.addf %94, %93 : vector<8x512xf32>
    %c0_56 = arith.constant 0 : index
    %c512 = arith.constant 512 : index
    %96 = vector.load %arg6[%c0_56, %c512] : memref<1x1152xf32, #tpu.memory_space<vmem>>, vector<1x512xf32>
    %97 = vector.broadcast %96 : vector<1x512xf32> to vector<8x512xf32>
    %98 = arith.addf %95, %97 : vector<8x512xf32>
    %99 = vector.extract_strided_slice %98 {offsets = [0, 0], sizes = [8, 128], strides = [1, 1]} : vector<8x512xf32> to vector<8x128xf32>
    %100 = arith.negf %99 : vector<8x128xf32>
    %101 = math.exp %100 : vector<8x128xf32>
    %cst_57 = arith.constant 1.000000e+00 : f32
    %102 = vector.broadcast %cst_57 : f32 to vector<8x128xf32>
    %103 = arith.addf %102, %101 : vector<8x128xf32>
    %104 = arith.divf %102, %103 : vector<8x128xf32>
    %105 = vector.extract_strided_slice %98 {offsets = [0, 128], sizes = [8, 128], strides = [1, 1]} : vector<8x512xf32> to vector<8x128xf32>
    %106 = arith.negf %105 : vector<8x128xf32>
    %107 = math.exp %106 : vector<8x128xf32>
    %cst_58 = arith.constant 1.000000e+00 : f32
    %108 = vector.broadcast %cst_58 : f32 to vector<8x128xf32>
    %109 = arith.addf %108, %107 : vector<8x128xf32>
    %110 = arith.divf %108, %109 : vector<8x128xf32>
    %111 = vector.extract_strided_slice %98 {offsets = [0, 256], sizes = [8, 128], strides = [1, 1]} : vector<8x512xf32> to vector<8x128xf32>
    %112 = vector.extract_strided_slice %98 {offsets = [0, 384], sizes = [8, 128], strides = [1, 1]} : vector<8x512xf32> to vector<8x128xf32>
    %113 = arith.mulf %104, %112 : vector<8x128xf32>
    %114 = arith.addf %111, %113 : vector<8x128xf32>
    %115 = math.tanh %114 : vector<8x128xf32>
    %cst_59 = arith.constant 1.000000e+00 : f32
    %116 = vector.broadcast %cst_59 : f32 to vector<8x128xf32>
    %117 = arith.subf %116, %110 : vector<8x128xf32>
    %118 = arith.mulf %117, %115 : vector<8x128xf32>
    %119 = arith.mulf %110, %89 : vector<8x128xf32>
    %120 = arith.addf %118, %119 : vector<8x128xf32>
    %c0_60 = arith.constant 0 : index
    %c0_61 = arith.constant 0 : index
    %c0_62 = arith.constant 0 : index
    %121 = vector.load %arg10[%c0_60, %c0_61, %c0_62] : memref<2x8x128xf32, #tpu.memory_space<vmem>>, vector<1x8x128xf32>
    %122 = vector.shape_cast %121 : vector<1x8x128xf32> to vector<8x128xf32>
    %123 = vector.shape_cast %87 : vector<8x128xf32> to vector<1x8x128xf32>
    tpu.vector_store %arg10[%c0_60, %c0_61, %c0_62], %123 {strides = array<i32>} : memref<2x8x128xf32, #tpu.memory_space<vmem>>, vector<1x8x128xf32>,
    %c1_63 = arith.constant 1 : index
    %c0_64 = arith.constant 0 : index
    %c0_65 = arith.constant 0 : index
    %124 = vector.load %arg10[%c1_63, %c0_64, %c0_65] : memref<2x8x128xf32, #tpu.memory_space<vmem>>, vector<1x8x128xf32>
    %125 = vector.shape_cast %124 : vector<1x8x128xf32> to vector<8x128xf32>
    %126 = vector.shape_cast %120 : vector<8x128xf32> to vector<1x8x128xf32>
    tpu.vector_store %arg10[%c1_63, %c0_64, %c0_65], %126 {strides = array<i32>} : memref<2x8x128xf32, #tpu.memory_space<vmem>>, vector<1x8x128xf32>,
    %127 = arith.truncf %87 : vector<8x128xf32> to vector<8x128xbf16>
    %c0_66 = arith.constant 0 : index
    %c0_67 = arith.constant 0 : index
    %c0_68 = arith.constant 0 : index
    %128 = vector.load %arg5[%c0_66, %c0_67, %c0_68] : memref<2x128x128xbf16, #tpu.memory_space<vmem>>, vector<1x128x128xbf16>
    %129 = vector.shape_cast %128 : vector<1x128x128xbf16> to vector<128x128xbf16>
    %cst_69 = arith.constant dense<0.000000e+00> : vector<8x128xf32>
    %130 = tpu.matmul %127, %129, %cst_69 {dimension_numbers = #tpu.dot_dimension_numbers<[1], [0], [0], [1], [0, 0, 1, 1], [], []>} : vector<8x128xbf16>, vector<128x128xbf16>, vector<8x128xf32> -> vector<8x128xf32>
    %131 = arith.truncf %120 : vector<8x128xf32> to vector<8x128xbf16>
    %c1_70 = arith.constant 1 : index
    %c0_71 = arith.constant 0 : index
    %c0_72 = arith.constant 0 : index
    %132 = vector.load %arg5[%c1_70, %c0_71, %c0_72] : memref<2x128x128xbf16, #tpu.memory_space<vmem>>, vector<1x128x128xbf16>
    %133 = vector.shape_cast %132 : vector<1x128x128xbf16> to vector<128x128xbf16>
    %cst_73 = arith.constant dense<0.000000e+00> : vector<8x128xf32>
    %134 = tpu.matmul %131, %133, %cst_73 {dimension_numbers = #tpu.dot_dimension_numbers<[1], [0], [0], [1], [0, 0, 1, 1], [], []>} : vector<8x128xbf16>, vector<128x128xbf16>, vector<8x128xf32> -> vector<8x128xf32>
    %135 = arith.addf %130, %134 : vector<8x128xf32>
    %c0_74 = arith.constant 0 : index
    %c1024 = arith.constant 1024 : index
    %136 = vector.load %arg6[%c0_74, %c1024] : memref<1x1152xf32, #tpu.memory_space<vmem>>, vector<1x128xf32>
    %137 = vector.broadcast %136 : vector<1x128xf32> to vector<8x128xf32>
    %138 = arith.addf %135, %137 : vector<8x128xf32>
    %c0_75 = arith.constant 0 : index
    %c0_76 = arith.constant 0 : index
    %c0_77 = arith.constant 0 : index
    %139 = vector.load %arg8[%c0_75, %c0_76, %c0_77] : memref<1x8x128xf32, #tpu.memory_space<vmem>>, vector<1x8x128xf32>
    %140 = vector.shape_cast %139 : vector<1x8x128xf32> to vector<8x128xf32>
    %141 = vector.shape_cast %138 : vector<8x128xf32> to vector<1x8x128xf32>
    tpu.vector_store %arg8[%c0_75, %c0_76, %c0_77], %141 {strides = array<i32>} : memref<1x8x128xf32, #tpu.memory_space<vmem>>, vector<1x8x128xf32>,
    %c0_i32_78 = arith.constant 0 : i32
    %142 = arith.cmpi eq, %arg0, %c0_i32_78 : i32
    %143 = arith.extui %142 : i1 to i32
    %c0_i32_79 = arith.constant 0 : i32
    %144 = arith.cmpi ne, %143, %c0_i32_79 : i32
    scf.if %144 {
      %c0_80 = arith.constant 0 : index
      %c0_81 = arith.constant 0 : index
      %c0_82 = arith.constant 0 : index
      %145 = vector.load %arg10[%c0_80, %c0_81, %c0_82] : memref<2x8x128xf32, #tpu.memory_space<vmem>>, vector<2x8x128xf32>
      %c0_83 = arith.constant 0 : index
      %c0_84 = arith.constant 0 : index
      %c0_85 = arith.constant 0 : index
      %146 = vector.load %arg9[%c0_83, %c0_84, %c0_85] : memref<2x8x128xf32, #tpu.memory_space<vmem>>, vector<2x8x128xf32>
      tpu.vector_store %arg9[%c0_83, %c0_84, %c0_85], %145 {strides = array<i32>} : memref<2x8x128xf32, #tpu.memory_space<vmem>>, vector<2x8x128xf32>,
    } else {
    }
    return
  }
  func.func @transform_0(%arg0: i32, %arg1: memref<1x8xi32, #tpu.memory_space<smem>>) -> (i32, i32, i32) {
    %c0_i32 = arith.constant 0 : i32
    %c0_i32_0 = arith.constant 0 : i32
    %c0_i32_1 = arith.constant 0 : i32
    %c0_i32_2 = arith.constant 0 : i32
    return %c0_i32, %c0_i32_0, %c0_i32_1 : i32, i32, i32
  }
  func.func @transform_1(%arg0: i32, %arg1: memref<1x8xi32, #tpu.memory_space<smem>>) -> (i32, i32) {
    %c0_i32 = arith.constant 0 : i32
    %c0_i32_0 = arith.constant 0 : i32
    %c0_i32_1 = arith.constant 0 : i32
    return %c0_i32, %c0_i32_0 : i32, i32
  }
  func.func @transform_2(%arg0: i32, %arg1: memref<1x8xi32, #tpu.memory_space<smem>>) -> (i32, i32, i32) {
    %c0_i32 = arith.constant 0 : i32
    %c0_i32_0 = arith.constant 0 : i32
    %c0_i32_1 = arith.constant 0 : i32
    %c0_i32_2 = arith.constant 0 : i32
    return %c0_i32, %c0_i32_0, %c0_i32_1 : i32, i32, i32
  }
  func.func @transform_3(%arg0: i32, %arg1: memref<1x8xi32, #tpu.memory_space<smem>>) -> (i32, i32, i32) {
    %c0_i32 = arith.constant 0 : i32
    %c0_i32_0 = arith.constant 0 : i32
    %c0_i32_1 = arith.constant 0 : i32
    %c0_i32_2 = arith.constant 0 : i32
    return %c0_i32, %c0_i32_0, %c0_i32_1 : i32, i32, i32
  }
  func.func @transform_4(%arg0: i32, %arg1: memref<1x8xi32, #tpu.memory_space<smem>>) -> (i32, i32) {
    %c0_i32 = arith.constant 0 : i32
    %c0_i32_0 = arith.constant 0 : i32
    %c0_i32_1 = arith.constant 0 : i32
    return %c0_i32, %c0_i32_0 : i32, i32
  }
  func.func @transform_5(%arg0: i32, %arg1: memref<1x8xi32, #tpu.memory_space<smem>>) -> (i32, i32, i32) {
    %c0_i32 = arith.constant 0 : i32
    %c0_i32_0 = arith.constant 0 : i32
    %c0_i32_1 = arith.constant 0 : i32
    %c0_i32_2 = arith.constant 0 : i32
    return %c0_i32, %c0_i32_0, %c0_i32_1 : i32, i32, i32
  }
  func.func @transform_6(%arg0: i32, %arg1: memref<1x8xi32, #tpu.memory_space<smem>>) -> (i32, i32, i32) {
    %c0_i32 = arith.constant 0 : i32
    %c0_i32_0 = arith.constant 0 : i32
    %c0_i32_1 = arith.constant 0 : i32
    return %arg0, %c0_i32, %c0_i32_0 : i32, i32, i32
  }
  func.func @transform_7(%arg0: i32, %arg1: memref<1x8xi32, #tpu.memory_space<smem>>) -> (i32, i32, i32) {
    %c0_i32 = arith.constant 0 : i32
    %c0_i32_0 = arith.constant 0 : i32
    %c0_i32_1 = arith.constant 0 : i32
    %c0_i32_2 = arith.constant 0 : i32
    return %c0_i32, %c0_i32_0, %c0_i32_1 : i32, i32, i32
  }
}

</mosaic_0001>

<bundles_post_ra>
// kernel: seq2seq_forward_seq.1
= control target key start
LH: loop header
LB: loop body
LE: loop exit
PB: predicated region body
PF: predicated region fallthrough
CT: control target
= control target key end

     0   :  { %s1982_s0 = inlined_call_operand.vmem [shape: s32[1,8], index: 0, kind: input, shape index: {}]   ;;  %s1983_s1 = inlined_call_operand.vmem [shape: f32[64,1,32], index: 1, kind: input, shape index: {}]   ;;  %s1984_s2 = inlined_call_operand.vmem [shape: bf16[32,1024], index: 2, kind: input, shape index: {}]   ;;  %s1985_s3 = inlined_call_operand.hbm [shape: bf16[2,128,512], index: 3, kind: input, shape index: {}]   ;;  %s1986_s4 = inlined_call_operand.hbm [shape: bf16[2,128,128], index: 4, kind: input, shape index: {}]   ;;  %s1987_s5 = inlined_call_operand.vmem [shape: f32[1,1152], index: 5, kind: input, shape index: {}]   ;;  %s1988_s6 = inlined_call_operand.vmem [shape: f32[2,8,128], index: 6, kind: input, shape index: {}]   ;;  %s1989_s7 = inlined_call_operand.hbm [shape: f32[1,8,128], index: 7, kind: output, shape index: {0}]   ;;  %s1990_s8 = inlined_call_operand.hbm [shape: f32[2,8,128], index: 8, kind: output, shape index: {1}]  }
   0x1   :  { %s14_s29 = sshll.u32 %s1982_s0, 4  ;;  %s15_s29 = int_to_ptr.vmem [resolvable:$true] %s14_s29 }
   0x2   :  { %s1615_s30 = scalar_lea.vmem %s15_s29, 16  ;;  %p1620_p1 = scmp.lt.s32.totalorder %s15_s29, %s15_s29 }
   0x3   :  { %p1616_p0 = scmp.ne.s32.totalorder %s15_s29, %s1615_s30  ;;  %p1621_p2 = scmp.lt.s32.totalorder %s1615_s30, %s1615_s30 }
   0x5   :  { %p1622_p3 = por %p1621_p2, %p1620_p1 }
   0x7   :  { %p1623_p4 = pnand %p1622_p3, %p1616_p0 }
   0x9   :  { %1626 = shalt.err (!%p1623_p4)  }
   0xa   :  { %s1725_s9 = smov [#allocation5]  }
   0xb   :  { %17 = dma.vmem_to_smem %s15_s29, 16, %s1725_s9, [#allocation4] }
   0xc   :  { %1715 = dma.done.wait [#allocation4], 16 }
   0xd   :  { %1716 = vsyncadd [#allocation4], 4294967280 }
   0xe   :  { %19 = sfence }
   0xf   :  { %20 = vsyncpa [#allocation7], 0 }
  0x10   :  { %21 = vsyncpa [#allocation10], 0 }
  0x11   :  { %22 = vsyncpa [#allocation8], 0 }
  0x12   :  { %23 = vsyncpa [#allocation13], 0  ;;  %s1726_s10 = smov [#allocation6]   ;;  %s1627_s13 = scalar_lea.hbm %s1985_s3, 8192 }
  0x13   :  { %s33_s11 = sshll.u32 %s1726_s10, 4  ;;  %p1628_p5 = scmp.ne.s32.totalorder %s1985_s3, %s1627_s13  ;;  %s34_s11 = int_to_ptr.vmem [resolvable:$true] %s33_s11 }
  0x14   :  { %p1631_p6 = scmp.lt.u32.totalorder %s1627_s13, %s1985_s3 }
  0x16   :  { %p1633_p7 = pnand %p1631_p6, %p1628_p5 }
  0x18   :  { %1636 = shalt.err (!%p1633_p7)
}
  0x19   :  { %s1637_s18 = scalar_lea.vmem %s34_s11, 8192  ;;  %p1642_p9 = scmp.lt.s32.totalorder %s34_s11, %s34_s11 }
  0x1a   :  { %p1638_p8 = scmp.ne.s32.totalorder %s34_s11, %s1637_s18  ;;  %p1643_p10 = scmp.lt.s32.totalorder %s1637_s18, %s1637_s18 }
  0x1c   :  { %p1644_p11 = por %p1643_p10, %p1642_p9 }
  0x1e   :  { %p1645_p12 = pnand %p1644_p11, %p1638_p8 }
  0x20   :  { %1648 = shalt.err (!%p1645_p12)
}
  0x21   :  { %s1727_s19 = smov 256   ;;  %s1728_s20 = smov 16  }
  0x22   :  { %39 = dma.hbm_to_vmem [thread:$0]  %s1985_s3, 8192, %s34_s11, [#allocation7], %s1727_s19, %s1727_s19, %s1728_s20  }
  0x23   :  { %s1729_s23 = smov [#allocation9]   ;;  %s1649_s27 = scalar_lea.hbm %s1986_s4, 2048 }
  0x24   :  { %s45_s24 = sshll.u32 %s1729_s23, 4  ;;  %p1650_p13 = scmp.ne.s32.totalorder %s1986_s4, %s1649_s27  ;;  %s46_s24 = int_to_ptr.vmem [resolvable:$true] %s45_s24 }
  0x25   :  { %p1653_p0 = scmp.lt.u32.totalorder %s1649_s27, %s1986_s4 }
  0x27   :  { %p1655_p1 = pnand %p1653_p0, %p1650_p13 }
  0x29   :  { %1658 = shalt.err (!%p1655_p1)
}
  0x2a   :  { %s1659_s10 = scalar_lea.vmem %s46_s24, 2048  ;;  %p1664_p3 = scmp.lt.s32.totalorder %s46_s24, %s46_s24 }
  0x2b   :  { %p1660_p2 = scmp.ne.s32.totalorder %s46_s24, %s1659_s10  ;;  %p1665_p4 = scmp.lt.s32.totalorder %s1659_s10, %s1659_s10 }
  0x2d   :  { %p1666_p5 = por %p1665_p4, %p1664_p3 }
  0x2f   :  { %p1667_p6 = pnand %p1666_p5, %p1660_p2 }
  0x31   :  { %1670 = shalt.err (!%p1667_p6)
}
  0x32   :  { %s1730_s3 = smov 64   ;;  %s1731_s11 = smov 4  }
  0x33   :  { %51 = dma.hbm_to_vmem [thread:$0]  %s1986_s4, 2048, %s46_s24, [#allocation10], %s1730_s3, %s1730_s3, %s1731_s11  }
  0x34   :  { %1717 = dma.done.wait [#allocation7], 8192  }
  0x35   :  { %1718 = vsyncadd [#allocation7], 4294959104 }
  0x36   :  { %1719 = dma.done.wait [#allocation10], 2048  }
  0x37   :  { %1720 = vsyncadd [#allocation10], 4294965248  ;;  %v1732_v0 = vmov 0   ;;  %s1813_s13 = sld [smem:[#allocation5]]  ;;  %s1815_s14 = sld [smem:[#allocation5 + $0x1]]  ;;  %v114_v1 = vld [vmem:[%s1984_s2] sm:$0xff] }
  0x38   :  { %246 = vmatprep.mubr.bf16.mxu0 %v1732_v0  ;;  %287 = vmatprep.mubr.bf16.mxu1 %v1732_v0  ;;  %s1817_s15 = sld [smem:[#allocation5 + $0x2]]  ;;  %s1819_s16 = sld [smem:[#allocation5 + $0x3]]  ;;  %v118_v2 = vld [vmem:[%s1984_s2 + $0x20] sm:$0xff]  ;;  %v115_v3 = vld [vmem:[%s1984_s2 + $0x8] sm:$0xff]  ;;  %v116_v14 = vld [vmem:[%s1984_s2 + $0x10] sm:$0xff]  ;;  %vm75_vm0 = vcmask 253952  }
  0x39   :  { %s1821_s4 = sld [smem:[#allocation5 + $0x4]]  ;;  %s1823_s17 = sld [smem:[#allocation5 + $0x5]]  ;;  %v1307_v4 = vcombine.high %v114_v1, %v118_v2  ;;  %v119_v5 = vld [vmem:[%s1984_s2 + $0x28] sm:$0xff]  ;;  %v1306_v6 = vcombine.low %v114_v1, %v118_v2  ;;  %v122_v7 = vld [vmem:[%s1984_s2 + $0x40] sm:$0xff]  ;;  %v120_v16 = vld [vmem:[%s1984_s2 + $0x30] sm:$0xff]  ;;  %vm210_vm1 = vcmask 261120  }
  0x3a   :  { %s1825_s18 = sld [smem:[#allocation5 + $0x6]]  ;;  %s1827_s19 = sld [smem:[#allocation5 + $0x7]]  ;;  %v126_v8 = vld [vmem:[%s1984_s2 + $0x60] sm:$0xff]  ;;  %v1309_v9 = vcombine.high %v115_v3, %v119_v5  ;;  %v1308_v10 = vcombine.low %v115_v3, %v119_v5  ;;  %v123_v12 = vld [vmem:[%s1984_s2 + $0x48] sm:$0xff]  ;;  %v117_v17 = vld [vmem:[%s1984_s2 + $0x18] sm:$0xff]  ;;  %v1311_v24 = vcombine.high %v116_v14, %v120_v16  ;;  %v1310_v35 = vcombine.low %v116_v14, %v120_v16 }
  0x3b   :  { %v1315_v11 = vcombine.high %v122_v7, %v126_v8  ;;  %v127_v13 = vld [vmem:[%s1984_s2 + $0x68] sm:$0xff]  ;;  %214 = vmatprep.subr.bf16.mxu0 %v1307_v4  ;;  %v121_v18 = vld [vmem:[%s1984_s2 + $0x38] sm:$0xff]  ;;  %v1314_v19 = vcombine.low %v122_v7, %v126_v8  ;;  %v124_v31 = vld [vmem:[%s1984_s2 + $0x50] sm:$0xff]  ;;  %vm1734_vm2 = vmmov 0   ;;  %s1735_s20 = smov [#allocation12]  }
  0x3c   :  { %v1317_v15 = vcombine.high %v123_v12, %v127_v13  ;;  %255 = vmatprep.subr.bf16.mxu1 %v1309_v9  ;;  %215 = vmatpush1.bf16.msra.mxu0 %v1306_v6  ;;  %v1316_v23 = vcombine.low %v123_v12, %v127_v13  ;;  %v1313_v28 = vcombine.high %v117_v17, %v121_v18  ;;  %v128_v32 = vld [vmem:[%s1984_s2 + $0x70] sm:$0xff]  ;;  %v125_v33 = vld [vmem:[%s1984_s2 + $0x58] sm:$0xff]  ;;  %v1928_v12 = vld [vmem:[%s1988_s6] sm:$0xff] }
  0x3d   :  { %s73_s28 = scalar_lea.vmem %s1983_s1, %s1813_s13  ;;  %s79_s9 = scalar_lea.vmem %s1983_s1, %s1815_s14  ;;  %256 = vmatpush1.bf16.msra.mxu1 %v1308_v10  ;;  %216 = vmatprep.subr.bf16.mxu0 %v1315_v11  ;;  %v129_v34 = vld [vmem:[%s1984_s2 + $0x78] sm:$0xff]  ;;  %v1312_v36 = vcombine.low %v117_v17, %v121_v18  ;;  %v1319_v39 = vcombine.high %v124_v31, %v128_v32  ;;  %v1318_v41 = vcombine.low %v124_v31, %v128_v32  ;;  %v1488_v44 = vld [vmem:[#allocation6 + $0xc] ss:$16 sps:$4 sm:$0xff]   ;;  %v1486_v46 = vld [vmem:[#allocation6 + $0x8] ss:$16 sps:$4 sm:$0xff]  }
  0x3e   :  { %s84_s22 = scalar_lea.vmem %s1983_s1, %s1817_s15  ;;  %s89_s24 = scalar_lea.vmem %s1983_s1, %s1819_s16  ;;  %v74_v20 = vld [vmem:[%s73_s28] sm:$0x1]  ;;  %257 = vmatprep.subr.bf16.mxu1 %v1317_v15  ;;  %v1321_v40 = vcombine.high %v125_v33, %v129_v34  ;;  %v1320_v42 = vcombine.low %v125_v33, %v129_v34  ;;  %v1485_v43 = vld [vmem:[#allocation6 + $0x4] ss:$16 sps:$4 sm:$0xff]   ;;  %v1483_v45 = vld [vmem:[#allocation6] ss:$16 sps:$4 sm:$0xff]   ;;  %v379_v17 = vpack.c.bf16 %v1928_v12, %v1928_v12 }
  0x3f   :  { %s94_s16 = scalar_lea.vmem %s1983_s1, %s1821_s4  ;;  %s99_s12 = scalar_lea.vmem %s1983_s1, %s1823_s17  ;;  %v80_v21 = vld [vmem:[%s79_s9] sm:$0x1]  ;;  %76 = vst.msk [vmem:[#allocation3] sm:$0x1] %vm75_vm0, %v74_v20  ;;  %v1491_v47 = vld [vmem:[#allocation6 + $0x24] ss:$16 sps:$4 sm:$0xff]  }
  0x40   :  { %s104_s27 = scalar_lea.vmem %s1983_s1, %s1825_s18  ;;  %s109_s30 = scalar_lea.vmem %s1983_s1, %s1827_s19  ;;  %v85_v22 = vld [vmem:[%s84_s22] sm:$0x1]  ;;  %81 = vst.msk [vmem:[#allocation3 + $0x1] sm:$0x1] %vm75_vm0, %v80_v21  ;;  %217 = vmatpush1.bf16.msra.mxu0 %v1314_v19  ;;  %v1494_v48 = vld [vmem:[#allocation6 + $0x2c] ss:$16 sps:$4 sm:$0xff]  }
  0x41   :  { %86 = vst.msk [vmem:[#allocation3 + $0x2] sm:$0x1] %vm75_vm0, %v85_v22  ;;  %v90_v25 = vld [vmem:[%s89_s24] sm:$0x1]  ;;  %258 = vmatpush1.bf16.msra.mxu1 %v1316_v23  ;;  %296 = vmatprep.subr.bf16.mxu0 %v1311_v24  ;;  %v1489_v49 = vld [vmem:[#allocation6 + $0x20] ss:$16 sps:$4 sm:$0xff]  }
  0x42   :  { %v95_v26 = vld [vmem:[%s94_s16] sm:$0x1]  ;;  %91 = vst.msk [vmem:[#allocation3 + $0x3] sm:$0x1] %vm75_vm0, %v90_v25  ;;  %337 = vmatprep.subr.bf16.mxu1 %v1313_v28  ;;  %v1497_v51 = vld [vmem:[#allocation6 + $0x44] ss:$16 sps:$4 sm:$0xff]  }
  0x43   :  { %v100_v27 = vld [vmem:[%s99_s12] sm:$0x1]  ;;  %96 = vst.msk [vmem:[#allocation3 + $0x4] sm:$0x1] %vm75_vm0, %v95_v26  ;;  %v1500_v52 = vld [vmem:[#allocation6 + $0x4c] ss:$16 sps:$4 sm:$0xff]  }
  0x44   :  { %101 = vst.msk [vmem:[#allocation3 + $0x5] sm:$0x1] %vm75_vm0, %v100_v27  ;;  %v105_v29 = vld [vmem:[%s104_s27] sm:$0x1]  ;;  %v1495_v53 = vld [vmem:[#allocation6 + $0x40] ss:$16 sps:$4 sm:$0xff]  }
  0x45   :  { %v110_v30 = vld [vmem:[%s109_s30] sm:$0x1]  ;;  %106 = vst.msk [vmem:[#allocation3 + $0x6] sm:$0x1] %vm75_vm0, %v105_v29  ;;  %v1503_v55 = vld [vmem:[#allocation6 + $0x64] ss:$16 sps:$4 sm:$0xff]  }
  0x46   :  { %111 = vst.msk [vmem:[#allocation3 + $0x7] sm:$0x1] %vm75_vm0, %v110_v30  ;;  %v1492_v50 = vld [vmem:[#allocation6 + $0x28] ss:$16 sps:$4 sm:$0xff]   ;;  %v1506_v56 = vld [vmem:[#allocation6 + $0x6c] ss:$16 sps:$4 sm:$0xff]  }
  0x47   :  { %v1498_v54 = vld [vmem:[#allocation6 + $0x48] ss:$16 sps:$4 sm:$0xff]   ;;  %v1501_v57 = vld [vmem:[#allocation6 + $0x60] ss:$16 sps:$4 sm:$0xff]   ;;  %v1509_v59 = vld [vmem:[#allocation6 + $0x84] ss:$16 sps:$4 sm:$0xff]  }
  0x48   :  { %v1504_v58 = vld [vmem:[#allocation6 + $0x68] ss:$16 sps:$4 sm:$0xff]   ;;  %v1512_v60 = vld [vmem:[#allocation6 + $0x8c] ss:$16 sps:$4 sm:$0xff]   ;;  %v1507_v61 = vld [vmem:[#allocation6 + $0x80] ss:$16 sps:$4 sm:$0xff]  }
  0x49   :  { %v1510_v62 = vld [vmem:[#allocation6 + $0x88] ss:$16 sps:$4 sm:$0xff]   ;;  %v1515_v63 = vld [vmem:[#allocation6 + $0xa4] ss:$16 sps:$4 sm:$0xff]   ;;  %v1518_v1 = vld [vmem:[#allocation6 + $0xac] ss:$16 sps:$4 sm:$0xff]  }
  0x4a   :  { %v1513_v2 = vld [vmem:[#allocation6 + $0xa0] ss:$16 sps:$4 sm:$0xff]   ;;  %v1516_v3 = vld [vmem:[#allocation6 + $0xa8] ss:$16 sps:$4 sm:$0xff]   ;;  %v1521_v4 = vld [vmem:[#allocation6 + $0xc4] ss:$16 sps:$4 sm:$0xff]  }
  0x4b   :  { %v1524_v5 = vld [vmem:[#allocation6 + $0xcc] ss:$16 sps:$4 sm:$0xff]   ;;  %v1519_v6 = vld [vmem:[#allocation6 + $0xc0] ss:$16 sps:$4 sm:$0xff]   ;;  %v1522_v7 = vld [vmem:[#allocation6 + $0xc8] ss:$16 sps:$4 sm:$0xff]  }
  0x4c   :  { %v1527_v8 = vld [vmem:[#allocation6 + $0xe4] ss:$16 sps:$4 sm:$0xff]   ;;  %v1530_v9 = vld [vmem:[#allocation6 + $0xec] ss:$16 sps:$4 sm:$0xff]   ;;  %v1525_v10 = vld [vmem:[#allocation6 + $0xe0] ss:$16 sps:$4 sm:$0xff]  }
  0x4d   :  { %v112_v37 = vld [vmem:[#allocation3] sm:$0xff]  ;;  %v1533_v13 = vld [vmem:[#allocation6 + $0x104] ss:$16 sps:$4 sm:$0xff]   ;;  %v1531_v15 = vld [vmem:[#allocation6 + $0x100] ss:$16 sps:$4 sm:$0xff]   ;;  %s1274_s13 = sshll.u32 %s1735_s20, 4  ;;  %s1275_s13 = int_to_ptr.vmem [resolvable:$true] %s1274_s13 }
  0x4e   :  { %v113_v38 = vpack.c.bf16 %v112_v37, %v112_v37  ;;  %v1528_v11 = vld [vmem:[#allocation6 + $0xe8] ss:$16 sps:$4 sm:$0xff]   ;;  %v1536_v14 = vld [vmem:[#allocation6 + $0x10c] ss:$16 sps:$4 sm:$0xff]   ;;  %v1539_v18 = vld [vmem:[#allocation6 + $0x124] ss:$16 sps:$4 sm:$0xff]   ;;  %p1676_p8 = scmp.lt.s32.totalorder %s1275_s13, %s1275_s13 }
  0x4f   :  { %v1534_v16 = vld [vmem:[#allocation6 + $0x108] ss:$16 sps:$4 sm:$0xff]   ;;  %v1542_v19 = vld [vmem:[#allocation6 + $0x12c] ss:$16 sps:$4 sm:$0xff]   ;;  %v1537_v20 = vld [vmem:[#allocation6 + $0x120] ss:$16 sps:$4 sm:$0xff]  }
  0x50   :  { %1322 = vmatmul.mubr.msk.bf16.vlgmr.msra.gmra.mrb[0].mxu0 %vm210_vm1, %v113_v38  ;;  %1323 = vmatmul.mubr.msk.bf16.vlgmr.msra.gmra.mrb[0].mxu1 %vm210_vm1, %v113_v38  ;;  %v1540_v21 = vld [vmem:[#allocation6 + $0x128] ss:$16 sps:$4 sm:$0xff]   ;;  %v1545_v22 = vld [vmem:[#allocation6 + $0x144] ss:$16 sps:$4 sm:$0xff]   ;;  %v1548_v23 = vld [vmem:[#allocation6 + $0x14c] ss:$16 sps:$4 sm:$0xff]  }
  0x51   :  { %297 = vmatpush1.bf16.msra.mxu0 %v1310_v35  ;;  %338 = vmatpush1.bf16.msra.mxu1 %v1312_v36  ;;  %v1543_v24 = vld [vmem:[#allocation6 + $0x140] ss:$16 sps:$4 sm:$0xff]   ;;  %v1546_v25 = vld [vmem:[#allocation6 + $0x148] ss:$16 sps:$4 sm:$0xff]   ;;  %v1551_v26 = vld [vmem:[#allocation6 + $0x164] ss:$16 sps:$4 sm:$0xff]  }
  0x52   :  { %298 = vmatprep.subr.bf16.mxu0 %v1319_v39  ;;  %339 = vmatprep.subr.bf16.mxu1 %v1321_v40  ;;  %v1554_v27 = vld [vmem:[#allocation6 + $0x16c] ss:$16 sps:$4 sm:$0xff]   ;;  %v1549_v28 = vld [vmem:[#allocation6 + $0x160] ss:$16 sps:$4 sm:$0xff]   ;;  %v1552_v29 = vld [vmem:[#allocation6 + $0x168] ss:$16 sps:$4 sm:$0xff]  }
  0x53   :  { %328 = vmatprep.mubr.bf16.mxu0 %v1732_v0  ;;  %369 = vmatprep.mubr.bf16.mxu1 %v1732_v0  ;;  %v1557_v30 = vld [vmem:[#allocation6 + $0x184] ss:$16 sps:$4 sm:$0xff]   ;;  %v1560_v31 = vld [vmem:[#allocation6 + $0x18c] ss:$16 sps:$4 sm:$0xff]   ;;  %v1555_v32 = vld [vmem:[#allocation6 + $0x180] ss:$16 sps:$4 sm:$0xff]  }
  0x54   :  { %v1563_v33 = vld [vmem:[#allocation6 + $0x1a4] ss:$16 sps:$4 sm:$0xff]   ;;  %v1566_v34 = vld [vmem:[#allocation6 + $0x1ac] ss:$16 sps:$4 sm:$0xff]   ;;  %v1561_v35 = vld [vmem:[#allocation6 + $0x1a0] ss:$16 sps:$4 sm:$0xff]  }
  0x55   :  { %299 = vmatpush1.bf16.msra.mxu0 %v1318_v41  ;;  %340 = vmatpush1.bf16.msra.mxu1 %v1320_v42  ;;  %v1564_v36 = vld [vmem:[#allocation6 + $0x1a8] ss:$16 sps:$4 sm:$0xff]   ;;  %v1569_v37 = vld [vmem:[#allocation6 + $0x1c4] ss:$16 sps:$4 sm:$0xff]   ;;  %v1567_v39 = vld [vmem:[#allocation6 + $0x1c0] ss:$16 sps:$4 sm:$0xff]  }
  0x56   :  { %572 = vmatprep.subr.bf16.mxu0 %v1485_v43  ;;  %613 = vmatprep.subr.bf16.mxu1 %v1488_v44  ;;  %v1570_v40 = vld [vmem:[#allocation6 + $0x1c8] ss:$16 sps:$4 sm:$0xff]   ;;  %v1575_v41 = vld [vmem:[#allocation6 + $0x1e4] ss:$16 sps:$4 sm:$0xff]   ;;  %v1578_v42 = vld [vmem:[#allocation6 + $0x1ec] ss:$16 sps:$4 sm:$0xff]  }
  0x57   :  { %v1573_v43 = vld [vmem:[#allocation6 + $0x1e0] ss:$16 sps:$4 sm:$0xff]   ;;  %v1576_v44 = vld [vmem:[#allocation6 + $0x1e8] ss:$16 sps:$4 sm:$0xff]   ;;  %s1671_s21 = scalar_lea.vmem %s1275_s13, 256 }
  0x58   :  { %1324 = vmatmul.mubr.msk.bf16.vlgmr.msra.gmra.mrb[4].mxu0 %vm210_vm1, %v113_v38  ;;  %1325 = vmatmul.mubr.msk.bf16.vlgmr.msra.gmra.mrb[4].mxu1 %vm210_vm1, %v113_v38  ;;  %v1572_v38 = vld [vmem:[#allocation6 + $0x1cc] ss:$16 sps:$4 sm:$0xff]   ;;  %p1672_p7 = scmp.ne.s32.totalorder %s1275_s13, %s1671_s21  ;;  %p1677_p9 = scmp.lt.s32.totalorder %s1671_s21, %s1671_s21 }
  0x59   :  { %573 = vmatpush1.bf16.msra.mxu0 %v1483_v45  ;;  %614 = vmatpush1.bf16.msra.mxu1 %v1486_v46  ;;  %v1937_v45 = vld [vmem:[%s1988_s6 + $0x8] sm:$0xff] }
  0x5a   :  { %574 = vmatprep.subr.bf16.mxu0 %v1491_v47  ;;  %615 = vmatprep.subr.bf16.mxu1 %v1494_v48  ;;  %v705_v46 = vpack.c.bf16 %v1937_v45, %v1937_v45  ;;  %v1579_v47 = vld [vmem:[#allocation9] sm:$0xff]   ;;  %v1733_v48 = vmov 0.0   ;;  %p1678_p10 = por %p1677_p9, %p1676_p8 }
  0x5b   :  { %604 = vmatprep.mubr.bf16.mxu0 %v1732_v0  ;;  %645 = vmatprep.mubr.bf16.mxu1 %v1732_v0 }
  0x5c   :  { %p1679_p11 = pnand %p1678_p10, %p1672_p7 }
  0x5d   :  { %575 = vmatpush1.bf16.msra.mxu0 %v1489_v49  ;;  %616 = vmatpush1.bf16.msra.mxu1 %v1492_v50  ;;  %v1580_v49 = vld [vmem:[#allocation9 + $0x8] sm:$0xff]   ;;  %v1581_v50 = vld [vmem:[#allocation9 + $0x10] sm:$0xff]  }
  0x5e   :  { %576 = vmatprep.subr.bf16.mxu0 %v1497_v51  ;;  %617 = vmatprep.subr.bf16.mxu1 %v1500_v52  ;;  %v1582_v51 = vld [vmem:[#allocation9 + $0x18] sm:$0xff]   ;;  %v1583_v52 = vld [vmem:[#allocation9 + $0x20] sm:$0xff]  }
  0x61   :  { %577 = vmatpush1.bf16.msra.mxu0 %v1495_v53  ;;  %618 = vmatpush1.bf16.msra.mxu1 %v1498_v54  ;;  %v1584_v53 = vld [vmem:[#allocation9 + $0x28] sm:$0xff]   ;;  %v1585_v54 = vld [vmem:[#allocation9 + $0x30] sm:$0xff]  }
  0x62   :  { %578 = vmatprep.subr.bf16.mxu0 %v1503_v55  ;;  %619 = vmatprep.subr.bf16.mxu1 %v1506_v56  ;;  %v1586_v55 = vld [vmem:[#allocation9 + $0x38] sm:$0xff]   ;;  %v1587_v56 = vld [vmem:[#allocation9 + $0x40] sm:$0xff]  }
  0x65   :  { %579 = vmatpush1.bf16.msra.mxu0 %v1501_v57  ;;  %620 = vmatpush1.bf16.msra.mxu1 %v1504_v58  ;;  %v1588_v57 = vld [vmem:[#allocation9 + $0x48] sm:$0xff]   ;;  %v1589_v58 = vld [vmem:[#allocation9 + $0x50] sm:$0xff]  }
  0x66   :  { %580 = vmatprep.subr.bf16.mxu0 %v1509_v59  ;;  %621 = vmatprep.subr.bf16.mxu1 %v1512_v60  ;;  %v1590_v59 = vld [vmem:[#allocation9 + $0x58] sm:$0xff]   ;;  %v1591_v60 = vld [vmem:[#allocation9 + $0x60] sm:$0xff]  }
  0x69   :  { %581 = vmatpush1.bf16.msra.mxu0 %v1507_v61  ;;  %622 = vmatpush1.bf16.msra.mxu1 %v1510_v62  ;;  %v1592_v61 = vld [vmem:[#allocation9 + $0x68] sm:$0xff]   ;;  %v1593_v62 = vld [vmem:[#allocation9 + $0x70] sm:$0xff]  }
  0x6a   :  { %582 = vmatprep.subr.bf16.mxu0 %v1515_v63  ;;  %623 = vmatprep.subr.bf16.mxu1 %v1518_v1  ;;  %v1594_v63 = vld [vmem:[#allocation9 + $0x78] sm:$0xff]  }
  0x6d   :  { %583 = vmatpush1.bf16.msra.mxu0 %v1513_v2  ;;  %624 = vmatpush1.bf16.msra.mxu1 %v1516_v3 }
  0x6e   :  { %584 = vmatprep.subr.bf16.mxu0 %v1521_v4  ;;  %625 = vmatprep.subr.bf16.mxu1 %v1524_v5 }
  0x71   :  { %585 = vmatpush1.bf16.msra.mxu0 %v1519_v6  ;;  %626 = vmatpush1.bf16.msra.mxu1 %v1522_v7 }
  0x72   :  { %586 = vmatprep.subr.bf16.mxu0 %v1527_v8  ;;  %627 = vmatprep.subr.bf16.mxu1 %v1530_v9 }
  0x75   :  { %587 = vmatpush1.bf16.msra.mxu0 %v1525_v10  ;;  %628 = vmatpush1.bf16.msra.mxu1 %v1528_v11 }
  0x76   :  { %899 = vmatprep.subr.bf16.mxu0 %v1533_v13  ;;  %940 = vmatprep.subr.bf16.mxu1 %v1536_v14 }
  0x78   :  { %605 = vmatmul.mubr.bf16.vlgmr.msra.gmra.mrb[8].mxu0 %v379_v17  ;;  %646 = vmatmul.mubr.bf16.vlgmr.msra.gmra.mrb[8].mxu1 %v379_v17 }
  0x79   :  { %900 = vmatpush1.bf16.msra.mxu0 %v1531_v15  ;;  %941 = vmatpush1.bf16.msra.mxu1 %v1534_v16 }
  0x7a   :  { %901 = vmatprep.subr.bf16.mxu0 %v1539_v18  ;;  %942 = vmatprep.subr.bf16.mxu1 %v1542_v19  ;;  %v660_v18 = vlaneseq }
  0x7b   :  { %931 = vmatprep.mubr.bf16.mxu0 %v1732_v0  ;;  %972 = vmatprep.mubr.bf16.mxu1 %v1732_v0  ;;  %v1558_v0 = vld [vmem:[#allocation6 + $0x188] ss:$16 sps:$4 sm:$0xff]  }
  0x7c   :  { %v1941_v19 = vshrl.u32 %v660_v18, 7 }
  0x7d   :  { %902 = vmatpush1.bf16.msra.mxu0 %v1537_v20  ;;  %943 = vmatpush1.bf16.msra.mxu1 %v1540_v21  ;;  %v658_v21 = vld [vmem:[%s1987_s5] sm:$0xf] }
  0x7e   :  { %903 = vmatprep.subr.bf16.mxu0 %v1545_v22  ;;  %944 = vmatprep.subr.bf16.mxu1 %v1548_v23  ;;  %v662_v20 = vsub.s32 0, %v1941_v19  ;;  %v666_v22 = vsub.s32 1, %v1941_v19 }
  0x80   :  { %v663_v23 = vrot.slane %v658_v21, %v662_v20 }
  0x81   :  { %904 = vmatpush1.bf16.msra.mxu0 %v1543_v24  ;;  %945 = vmatpush1.bf16.msra.mxu1 %v1546_v25 }
  0x82   :  { %905 = vmatprep.subr.bf16.mxu0 %v1551_v26  ;;  %946 = vmatprep.subr.bf16.mxu1 %v1554_v27 }
  0x85   :  { %906 = vmatpush1.bf16.msra.mxu0 %v1549_v28  ;;  %947 = vmatpush1.bf16.msra.mxu1 %v1552_v29 }
  0x86   :  { %907 = vmatprep.subr.bf16.mxu0 %v1557_v30  ;;  %948 = vmatprep.subr.bf16.mxu1 %v1560_v31  ;;  %v667_v31 = vrot.slane %v658_v21, %v666_v22 }
  0x89   :  { %908 = vmatpush1.bf16.msra.mxu0 %v1555_v32  ;;  %949 = vmatpush1.bf16.msra.mxu1 %v1558_v0 }
  0x8a   :  { %909 = vmatprep.subr.bf16.mxu0 %v1563_v33  ;;  %950 = vmatprep.subr.bf16.mxu1 %v1566_v34 }
  0x8d   :  { %910 = vmatpush1.bf16.msra.mxu0 %v1561_v35  ;;  %951 = vmatpush1.bf16.msra.mxu1 %v1564_v36 }
  0x8e   :  { %911 = vmatprep.subr.bf16.mxu0 %v1569_v37  ;;  %952 = vmatprep.subr.bf16.mxu1 %v1572_v38 }
  0x91   :  { %912 = vmatpush1.bf16.msra.mxu0 %v1567_v39  ;;  %953 = vmatpush1.bf16.msra.mxu1 %v1570_v40 }
  0x92   :  { %913 = vmatprep.subr.bf16.mxu0 %v1575_v41  ;;  %954 = vmatprep.subr.bf16.mxu1 %v1578_v42  ;;  %v674_v42 = vsub.s32 3, %v1941_v19 }
  0x95   :  { %914 = vmatpush1.bf16.msra.mxu0 %v1573_v43  ;;  %955 = vmatpush1.bf16.msra.mxu1 %v1576_v44  ;;  %v670_v43 = vsub.s32 2, %v1941_v19 }
  0x96   :  { %1449 = vmatprep.subr.bf16.mxu1 %v1733_v48  ;;  %1429 = vmatprep.subr.bf16.mxu0 %v1733_v48 }
  0x98   :  { %932 = vmatmul.mubr.bf16.vlgmr.msra.gmra.mrb[12].mxu0 %v705_v46  ;;  %973 = vmatmul.mubr.bf16.vlgmr.msra.gmra.mrb[12].mxu1 %v705_v46  ;;  %v675_v46 = vrot.slane %v658_v21, %v674_v42 }
  0x99   :  { %1450 = vmatpush3.bf16.msra.mxu1 %v1579_v47  ;;  %1465 = vmatprep.mubr.msk.bf16.mxu1 %vm1734_vm2, %v1733_v48  ;;  %v671_v47 = vrot.slane %v658_v21, %v670_v43 }
  0x9a   :  { %1451 = vmatprep.subr.bf16.mxu1 %v1733_v48  ;;  %1445 = vmatprep.mubr.msk.bf16.mxu0 %vm1734_vm2, %v1733_v48 }
  0x9b   :  { %1430 = vmatpush3.bf16.msra.mxu0 %v1587_v56 }
  0x9c   :  { %1431 = vmatprep.subr.bf16.mxu0 %v1733_v48 }
  0x9d   :  { %1452 = vmatpush3.bf16.msra.mxu1 %v1580_v49  ;;  %v985_v49 = vld [vmem:[%s1987_s5 + $0x4] sm:$0xf] }
  0x9e   :  { %1453 = vmatprep.subr.bf16.mxu1 %v1733_v48  ;;  %v1002_v21 = vrot.slane %v985_v49, %v674_v42 }
  0x9f   :  { %1432 = vmatpush3.bf16.msra.mxu0 %v1588_v57 }
  0xa0   :  { %1433 = vmatprep.subr.bf16.mxu0 %v1733_v48 }
  0xa1   :  { %1454 = vmatpush3.bf16.msra.mxu1 %v1581_v50 }
  0xa2   :  { %1455 = vmatprep.subr.bf16.mxu1 %v1733_v48 }
  0xa3   :  { %1434 = vmatpush3.bf16.msra.mxu0 %v1589_v58 }
  0xa4   :  { %1435 = vmatprep.subr.bf16.mxu0 %v1733_v48 }
  0xa5   :  { %1456 = vmatpush3.bf16.msra.mxu1 %v1582_v51 }
  0xa6   :  { %1457 = vmatprep.subr.bf16.mxu1 %v1733_v48 }
  0xa7   :  { %1436 = vmatpush3.bf16.msra.mxu0 %v1590_v59 }
  0xa8   :  { %1437 = vmatprep.subr.bf16.mxu0 %v1733_v48 }
  0xa9   :  { %1458 = vmatpush3.bf16.msra.mxu1 %v1583_v52 }
  0xaa   :  { %1459 = vmatprep.subr.bf16.mxu1 %v1733_v48 }
  0xab   :  { %1438 = vmatpush3.bf16.msra.mxu0 %v1591_v60 }
  0xac   :  { %1439 = vmatprep.subr.bf16.mxu0 %v1733_v48 }
  0xad   :  { %1460 = vmatpush3.bf16.msra.mxu1 %v1584_v53 }
  0xae   :  { %1461 = vmatprep.subr.bf16.mxu1 %v1733_v48 }
  0xaf   :  { %1440 = vmatpush3.bf16.msra.mxu0 %v1592_v61 }
  0xb0   :  { %1441 = vmatprep.subr.bf16.mxu0 %v1733_v48 }
  0xb1   :  { %1462 = vmatpush3.bf16.msra.mxu1 %v1585_v54  ;;  %v990_v54 = vrot.slane %v985_v49, %v662_v20 }
  0xb2   :  { %1463 = vmatprep.subr.bf16.mxu1 %v1733_v48 }
  0xb3   :  { %1442 = vmatpush3.bf16.msra.mxu0 %v1593_v62 }
  0xb4   :  { %1443 = vmatprep.subr.bf16.mxu0 %v1733_v48 }
  0xb5   :  { %1464 = vmatpush3.bf16.msra.mxu1 %v1586_v55 }
  0xb7   :  { %1444 = vmatpush3.bf16.msra.mxu0 %v1594_v63  ;;  %v994_v63 = vrot.slane %v985_v49, %v666_v22  ;;  %v998_v22 = vrot.slane %v985_v49, %v670_v43 }
 0x123   :  { %v248_v1 = vpop.f32.mrb[0].mxu0  ;;  %v289_v2 = vpop.f32.mrb[0].mxu1 }
 0x124   :  { %v250_v3 = vpop.f32.mrb[1].mxu0  ;;  %v291_v4 = vpop.f32.mrb[1].mxu1 }
 0x125   :  { %v252_v5 = vpop.f32.mrb[2].mxu0  ;;  %v293_v6 = vpop.f32.mrb[2].mxu1 }
 0x126   :  { %v253_v7 = vpop.f32.mrb[3].mxu0  ;;  %v294_v8 = vpop.f32.mrb[3].mxu1 }
 0x12b   :  { %v330_v9 = vpop.f32.mrb[4].mxu0  ;;  %v371_v10 = vpop.f32.mrb[4].mxu1 }
 0x12c   :  { %v332_v11 = vpop.f32.mrb[5].mxu0  ;;  %v373_v13 = vpop.f32.mrb[5].mxu1 }
 0x12d   :  { %v334_v14 = vpop.f32.mrb[6].mxu0  ;;  %v375_v15 = vpop.f32.mrb[6].mxu1 }
 0x12e   :  { %v335_v16 = vpop.f32.mrb[7].mxu0  ;;  %v376_v17 = vpop.f32.mrb[7].mxu1 }
 0x14b   :  { %v606_v24 = vpop.f32.mrb[8].mxu0  ;;  %v647_v25 = vpop.f32.mrb[8].mxu1 }
 0x14c   :  { %v654_v26 = vadd.f32 %v606_v24, %v248_v1  ;;  %v656_v27 = vadd.f32 %v647_v25, %v289_v2  ;;  %v608_v28 = vpop.f32.mrb[9].mxu0  ;;  %v649_v29 = vpop.f32.mrb[9].mxu1 }
 0x14d   :  { %v655_v30 = vadd.f32 %v608_v28, %v250_v3  ;;  %v657_v32 = vadd.f32 %v649_v29, %v291_v4  ;;  %v610_v0 = vpop.f32.mrb[10].mxu0  ;;  %v651_v33 = vpop.f32.mrb[10].mxu1 }
 0x14e   :  { %v680_v34 = vadd.f32 %v663_v23, %v654_v26  ;;  %v611_v35 = vpop.f32.mrb[11].mxu0  ;;  %v652_v36 = vpop.f32.mrb[11].mxu1  ;;  %v682_v52 = vadd.f32 %v671_v47, %v656_v27 }
 0x14f   :  { %v681_v38 = vadd.f32 %v667_v31, %v655_v30  ;;  %v683_v50 = vadd.f32 %v675_v46, %v657_v32 }
 0x150   :  { %v1358_v37 = vmul.f32 -1.442695, %v680_v34 }
 0x151   :  { %v1359_v39 = vmul.f32 -1.442695, %v681_v38 }
 0x152   :  { %1595 = vpow2.f32 %v1358_v37 }
 0x153   :  { %1597 = vpow2.f32 %v1359_v39 }
 0x15c   :  { %v1596_v40 = vpop.eup %1595 }
 0x15d   :  { %v687_v41 = vadd.f32 1.0, %v1596_v40  ;;  %v1598_v44 = vpop.eup %1597 }
 0x15e   :  { %v693_v48 = vadd.f32 1.0, %v1598_v44 }
 0x15f   :  { %1599 = vrcp.f32 %v687_v41 }
 0x160   :  { %1601 = vrcp.f32 %v693_v48 }
 0x169   :  { %v1600_v51 = vpop.eup %1599 }
 0x16a   :  { %v696_v53 = vmul.f32 %v1600_v51, %v683_v50  ;;  %v1602_v14 = vpop.eup %1601 }
 0x16b   :  { %v933_v55 = vpop.f32.mrb[12].mxu0  ;;  %v974_v56 = vpop.f32.mrb[12].mxu1  ;;  %v699_v16 = vsub.f32 1.0, %v1602_v14 }
 0x16c   :  { %v697_v57 = vadd.f32 %v696_v53, %v682_v52  ;;  %v981_v58 = vadd.f32 %v933_v55, %v330_v9  ;;  %v983_v59 = vadd.f32 %v974_v56, %v371_v10  ;;  %v935_v60 = vpop.f32.mrb[13].mxu0  ;;  %v976_v61 = vpop.f32.mrb[13].mxu1  ;;  %v701_v10 = vmul.f32 %v1602_v14, %v1928_v12 }
 0x16d   :  { %v982_v62 = vadd.f32 %v935_v60, %v332_v11  ;;  %v984_v1 = vadd.f32 %v976_v61, %v373_v13  ;;  %v937_v2 = vpop.f32.mrb[14].mxu0  ;;  %v978_v3 = vpop.f32.mrb[14].mxu1 }
 0x16e   :  { %1603 = vtanh.f32 %v697_v57  ;;  %v1007_v4 = vadd.f32 %v990_v54, %v981_v58  ;;  %v938_v5 = vpop.f32.mrb[15].mxu0  ;;  %v979_v6 = vpop.f32.mrb[15].mxu1  ;;  %v1009_v26 = vadd.f32 %v998_v22, %v983_v59 }
 0x16f   :  { %v1008_v8 = vadd.f32 %v994_v63, %v982_v62  ;;  %v1010_v24 = vadd.f32 %v1002_v21, %v984_v1 }
 0x170   :  { %v1392_v7 = vmul.f32 -1.442695, %v1007_v4 }
 0x171   :  { %v1393_v15 = vmul.f32 -1.442695, %v1008_v8 }
 0x172   :  { %1605 = vpow2.f32 %v1392_v7 }
 0x173   :  { %1607 = vpow2.f32 %v1393_v15 }
 0x178   :  { %v1604_v17 = vpop.eup %1603 }
 0x179   :  { %v700_v9 = vmul.f32 %v1604_v17, %v699_v16 }
 0x17b   :  { %v702_v11 = vadd.f32 %v701_v10, %v700_v9 }
 0x17c   :  { %v1606_v18 = vpop.eup %1605 }
 0x17d   :  { %v1014_v13 = vadd.f32 1.0, %v1606_v18  ;;  %v1032_v19 = vpack.c.bf16 %v702_v11, %v702_v11  ;;  %1257 = vst [vmem:[#allocation12] sm:$0xff] %v702_v11  ;;  %v1608_v20 = vpop.eup %1607 }
 0x17e   :  { %v1020_v23 = vadd.f32 1.0, %v1608_v20 }
 0x17f   :  { %1609 = vrcp.f32 %v1014_v13  ;;  %1466 = vmatmul.mubr.bf16.vlgmr.msra.gmra.mrb[16].mxu1 %v1032_v19 }
 0x180   :  { %1611 = vrcp.f32 %v1020_v23 }
 0x189   :  { %v1610_v25 = vpop.eup %1609 }
 0x18a   :  { %v1023_v27 = vmul.f32 %v1610_v25, %v1010_v24  ;;  %v1612_v29 = vpop.eup %1611 }
 0x18b   :  { %v1026_v12 = vsub.f32 1.0, %v1612_v29  ;;  %v1028_v32 = vmul.f32 %v1612_v29, %v1937_v45 }
 0x18c   :  { %v1024_v28 = vadd.f32 %v1023_v27, %v1009_v26 }
 0x18e   :  { %1613 = vtanh.f32 %v1024_v28 }
 0x198   :  { %v1614_v30 = vpop.eup %1613 }
 0x199   :  { %v1027_v31 = vmul.f32 %v1614_v30, %v1026_v12 }
 0x19b   :  { %v1029_v0 = vadd.f32 %v1028_v32, %v1027_v31 }
 0x19d   :  { %v1049_v33 = vpack.c.bf16 %v1029_v0, %v1029_v0  ;;  %1258 = vst [vmem:[#allocation12 + $0x8] sm:$0xff] %v1029_v0 }
 0x19f   :  { %1446 = vmatmul.mubr.bf16.vlgmr.msra.gmra.mrb[16].mxu0 %v1049_v33 }
 0x1a0   :  { %1682 = shalt.err (!%p1679_p11)
}
 0x1a1   :  { %s1683_s25 = scalar_lea.hbm %s1990_s8, 256 }
 0x1a2   :  { %p1684_p12 = scmp.ne.s32.totalorder %s1990_s8, %s1683_s25  ;;  %p1687_p13 = scmp.lt.u32.totalorder %s1683_s25, %s1990_s8 }
 0x1a4   :  { %p1689_p0 = pnand %p1687_p13, %p1684_p12 }
 0x1a6   :  { %1692 = shalt.err (!%p1689_p0)
}
 0x1a7   :  { %s1736_s17 = smov 128   ;;  %s1737_s30 = smov 8   ;;  %v1410_v38 = vld [vmem:[%s1987_s5 + $0x8] ss:$0 sm:$0xff] }
 0x1a8   :  { %1280 = dma.vmem_to_hbm [thread:$0]  %s1275_s13, 256, %s1990_s8, [#allocation13], %s1736_s17, %s1736_s17, %s1737_s30  }
 0x1a9   :  { %s1738_s9 = smov [#allocation11]  }
 0x1aa   :  { %s1265_s22 = sshll.u32 %s1738_s9, 4  ;;  %s1266_s22 = int_to_ptr.vmem [resolvable:$true] %s1265_s22 }
 0x1ab   :  { %s1693_s24 = scalar_lea.vmem %s1266_s22, 128  ;;  %p1698_p2 = scmp.lt.s32.totalorder %s1266_s22, %s1266_s22 }
 0x1ac   :  { %p1694_p1 = scmp.ne.s32.totalorder %s1266_s22, %s1693_s24  ;;  %p1699_p3 = scmp.lt.s32.totalorder %s1693_s24, %s1693_s24 }
 0x1ae   :  { %p1700_p4 = por %p1699_p3, %p1698_p2 }
 0x1b0   :  { %p1701_p5 = pnand %p1700_p4, %p1694_p1 }
 0x252   :  { %v1237_v45 = vpop.f32.mrb[16].mxu1 }
 0x253   :  { %v1467_v34 = vpop.f32.mrb[17].mxu1 }
 0x254   :  { %v1240_v35 = vpop.f32.mrb[18].mxu1 }
 0x255   :  { %v1468_v36 = vpop.f32.mrb[19].mxu1 }
 0x272   :  { %v1149_v37 = vpop.f32.mrb[16].mxu0 }
 0x273   :  { %v1238_v39 = vadd.f32 %v1237_v45, %v1149_v37  ;;  %v1447_v40 = vpop.f32.mrb[17].mxu0 }
 0x274   :  { %v1152_v41 = vpop.f32.mrb[18].mxu0 }
 0x275   :  { %v1250_v42 = vadd.f32 %v1410_v38, %v1238_v39  ;;  %v1448_v43 = vpop.f32.mrb[19].mxu0 }
 0x277   :  { %1251 = vst [vmem:[#allocation11] sm:$0xff] %v1250_v42 }
 0x278   :  { %1704 = shalt.err (!%p1701_p5)
}
 0x279   :  { %s1705_s5 = scalar_lea.hbm %s1989_s7, 128 }
 0x27a   :  { %p1706_p6 = scmp.ne.s32.totalorder %s1989_s7, %s1705_s5  ;;  %p1709_p7 = scmp.lt.u32.totalorder %s1705_s5, %s1989_s7 }
 0x27c   :  { %p1711_p8 = pnand %p1709_p7, %p1706_p6 }
 0x27e   :  { %1714 = shalt.err (!%p1711_p8)
}
 0x27f   :  { %1268 = dma.vmem_to_hbm [thread:$0]  %s1266_s22, 128, %s1989_s7, [#allocation8]  }
 0x280   :  { %1721 = dma.done.wait [#allocation8], 128  }
 0x281   :  { %1722 = vsyncadd [#allocation8], 4294967168 }
 0x282   :  { %1723 = dma.done.wait [#allocation13], 256  }
 0x283   :  { %1724 = vsyncadd [#allocation13], 4294967040 }
 0x284   :  { %1287 = vsyncpa [#allocation7], 1 }
 0x285   :  { %1288 = vsyncpa [#allocation10], 1 }
 0x286   :  { %1289 = vsyncpa [#allocation8], 1 }
 0x287   :  { %1290 = vsyncpa [#allocation13], 1 }

</bundles_post_ra>
